<compile_context>
chip_gen: v6e
topology: v6e:2x2x1
jax: 0.10.0
libtpu: 0.0.40
codegen_flags: <defaults>
</compile_context>

<pallas_src>
import functools

import jax
import jax.numpy as jnp
from jax.experimental import pallas as pl
from jax.experimental.pallas import tpu as pltpu

_LANE = 128
_MAX_TILE_ROWS = 2048   # 2048 x 128 f32 = 1 MiB per input tile
_NUM_SPLITS = 2         # leading "parallel" axis (2 TCs on v7x)


def _delta_count_kernel(o_ref, l_ref, out_ref, acc_ref, *, thresh, n_elems,
                        block_rows):
    c = pl.program_id(0)
    i = pl.program_id(1)
    inner = pl.num_programs(1)

    # Zero the per-core resident accumulator at the start of its inner loop.
    @pl.when(i == 0)
    def _():
        acc_ref[...] = jnp.zeros_like(acc_ref)

    o = o_ref[...].astype(jnp.float32)
    l = l_ref[...].astype(jnp.float32)

    # Global element index of every slot in this tile (unclamped), used to
    # exactly mask the tail / any duplicated or DMA-padded block.
    row_block = c * inner + i
    row_iota = jax.lax.broadcasted_iota(jnp.int32, (block_rows, _LANE), 0)
    lane_iota = jax.lax.broadcasted_iota(jnp.int32, (block_rows, _LANE), 1)
    gidx = (row_block * block_rows + row_iota) * _LANE + lane_iota
    in_bounds = gidx < n_elems

    # max(o/l, l/o) < thresh  <=>  (o < thresh*l) & (l < thresh*o)  (o, l >= 0)
    hit = (o < thresh * l) & (l < thresh * o) & in_bounds
    acc_ref[...] = acc_ref[...] + hit.astype(jnp.int32)

    # One cross-sublane reduce per core, into a lane-dense (1, 128) partial.
    @pl.when(i == inner - 1)
    def _():
        out_ref[...] = jnp.sum(acc_ref[...], axis=0, keepdims=True)


def delta_smaller(outputs, targets, p=1):
    """Forward of DeltaSmaller(p).forward(outputs, targets) (depth metric)."""
    batch_size = outputs.shape[0]
    n = outputs.size  # delta.numel()

    o = outputs.reshape(-1)
    t = targets.reshape(-1)

    # Only pad to a lane multiple when strictly necessary (<=127 elements);
    # padded slots are excluded by the in-kernel index mask.
    rem = n % _LANE
    if rem:
        pad = _LANE - rem
        o = jnp.concatenate([o, jnp.ones((pad,), o.dtype)])
        t = jnp.concatenate([t, jnp.ones((pad,), t.dtype)])

    o2 = o.reshape(-1, _LANE)
    t2 = t.reshape(-1, _LANE)
    rows = o2.shape[0]

    block_rows = min(_MAX_TILE_ROWS, rows)
    row_blocks = pl.cdiv(rows, block_rows)
    inner = pl.cdiv(row_blocks, _NUM_SPLITS)

    def in_map(c, i):
        # Clamp so duplicated tail blocks stay in-bounds; their contribution
        # is zeroed by the in-kernel global-index mask.
        return (jnp.minimum(c * inner + i, row_blocks - 1), 0)

    thresh = float(1.25 ** p)

    partials = pl.pallas_call(
        functools.partial(_delta_count_kernel, thresh=thresh, n_elems=n,
                          block_rows=block_rows),
        out_shape=jax.ShapeDtypeStruct((1, _NUM_SPLITS * _LANE), jnp.int32),
        grid=(_NUM_SPLITS, inner),
        in_specs=[
            pl.BlockSpec((block_rows, _LANE), in_map),
            pl.BlockSpec((block_rows, _LANE), in_map),
        ],
        out_specs=pl.BlockSpec((1, _LANE), lambda c, i: (0, c)),
        scratch_shapes=[pltpu.VMEM((block_rows, _LANE), jnp.int32)],
        compiler_params=pltpu.CompilerParams(
            dimension_semantics=("parallel", "arbitrary")),
    )(o2, t2)

    count = jnp.sum(partials).astype(jnp.float32)
    # occurrences / numel  (metric), then / batch_size  (module forward)
    return count / (float(n) * float(batch_size))


def _reference(outputs, targets, p=1):
    v1 = outputs / targets
    v2 = targets / outputs
    delta = jnp.maximum(v1, v2)
    occ = jnp.sum((delta < 1.25 ** p).astype(jnp.float32))
    return occ / float(delta.size) / float(outputs.shape[0])


if __name__ == "__main__":
    key = jax.random.PRNGKey(0)
    k1, k2, k3, k4 = jax.random.split(key, 4)

    # Main case: NCHW depth maps, matches the module's expected usage.
    B, C, H, W = 2, 4, 16, 16
    outputs = jax.random.uniform(k1, (B, C, H, W), jnp.float32, 0.5, 2.0)
    targets = jax.random.uniform(k2, (B, C, H, W), jnp.float32, 0.5, 2.0)

    result = jax.block_until_ready(delta_smaller(outputs, targets, p=1))
    expected = _reference(outputs, targets, p=1)
    assert jnp.allclose(result, expected, rtol=1e-6, atol=1e-6), (result, expected)

    # Odd-sized case: exercises the lane pad + in-kernel tail masking path.
    o2 = jax.random.uniform(k3, (1, 3, 7, 9), jnp.float32, 0.5, 2.0)
    t2 = jax.random.uniform(k4, (1, 3, 7, 9), jnp.float32, 0.5, 2.0)
    result2 = jax.block_until_ready(delta_smaller(o2, t2, p=2))
    expected2 = _reference(o2, t2, p=2)
    assert jnp.allclose(result2, expected2, rtol=1e-6, atol=1e-6), (result2, expected2)

    print("KERNEL_OK")
</pallas_src>

<mosaic_0001>
module attributes {stable_mosaic.version = 11 : i64} {
  func.func @_delta_count_kernel(%arg0: i32, %arg1: i32, %arg2: memref<16x128xf32, #tpu.memory_space<vmem>>, %arg3: memref<16x128xf32, #tpu.memory_space<vmem>>, %arg4: memref<1x128xi32, #tpu.memory_space<vmem>>, %arg5: memref<16x128xi32, #tpu.memory_space<vmem>>) attributes {dimension_semantics = [#tpu.dimension_semantics<parallel>, #tpu.dimension_semantics<arbitrary>], iteration_bounds = array<i64: 2, 1>, scalar_prefetch = 0 : i64, scratch_operands = 1 : i64, tpu.core_type = #tpu.core_type<tc>, window_params = [{transform_indices = @transform_0, window_bounds = array<i64: 16, 128>}, {transform_indices = @transform_1, window_bounds = array<i64: 16, 128>}, {transform_indices = @transform_2, window_bounds = array<i64: 1, 128>}]} {
    %c0_i32 = arith.constant 0 : i32
    %0 = arith.cmpi eq, %arg1, %c0_i32 : i32
    %1 = arith.extui %0 : i1 to i32
    %c0_i32_0 = arith.constant 0 : i32
    %2 = arith.cmpi ne, %1, %c0_i32_0 : i32
    scf.if %2 {
      %c0_i32_11 = arith.constant 0 : i32
      %32 = vector.broadcast %c0_i32_11 : i32 to vector<16x128xi32>
      %c0_12 = arith.constant 0 : index
      %c0_13 = arith.constant 0 : index
      %33 = vector.load %arg5[%c0_12, %c0_13] : memref<16x128xi32, #tpu.memory_space<vmem>>, vector<16x128xi32>
      tpu.vector_store %arg5[%c0_12, %c0_13], %32 {strides = array<i32>} : memref<16x128xi32, #tpu.memory_space<vmem>>, vector<16x128xi32>,
    } else {
    }
    %c0 = arith.constant 0 : index
    %c0_1 = arith.constant 0 : index
    %3 = vector.load %arg2[%c0, %c0_1] : memref<16x128xf32, #tpu.memory_space<vmem>>, vector<16x128xf32>
    %c0_2 = arith.constant 0 : index
    %c0_3 = arith.constant 0 : index
    %4 = vector.load %arg3[%c0_2, %c0_3] : memref<16x128xf32, #tpu.memory_space<vmem>>, vector<16x128xf32>
    %c1_i32 = arith.constant 1 : i32
    %5 = arith.muli %arg0, %c1_i32 : i32
    %6 = arith.addi %5, %arg1 : i32
    %7 = tpu.iota {dimensions = array<i32: 0>} : vector<16x128xi32>
    %8 = tpu.iota {dimensions = array<i32: 1>} : vector<16x128xi32>
    %c16_i32 = arith.constant 16 : i32
    %9 = arith.muli %6, %c16_i32 : i32
    %10 = vector.broadcast %9 : i32 to vector<16x128xi32>
    %11 = arith.addi %10, %7 : vector<16x128xi32>
    %c128_i32 = arith.constant 128 : i32
    %12 = vector.broadcast %c128_i32 : i32 to vector<16x128xi32>
    %13 = arith.muli %11, %12 : vector<16x128xi32>
    %14 = arith.addi %13, %8 : vector<16x128xi32>
    %c2048_i32 = arith.constant 2048 : i32
    %15 = vector.broadcast %c2048_i32 : i32 to vector<16x128xi32>
    %16 = arith.cmpi slt, %14, %15 : vector<16x128xi32>
    %cst = arith.constant 1.250000e+00 : f32
    %17 = vector.broadcast %cst : f32 to vector<16x128xf32>
    %18 = arith.mulf %17, %4 : vector<16x128xf32>
    %19 = arith.cmpf olt, %3, %18 : vector<16x128xf32>
    %cst_4 = arith.constant 1.250000e+00 : f32
    %20 = vector.broadcast %cst_4 : f32 to vector<16x128xf32>
    %21 = arith.mulf %20, %3 : vector<16x128xf32>
    %22 = arith.cmpf olt, %4, %21 : vector<16x128xf32>
    %23 = arith.andi %19, %22 : vector<16x128xi1>
    %24 = arith.andi %23, %16 : vector<16x128xi1>
    %c0_5 = arith.constant 0 : index
    %c0_6 = arith.constant 0 : index
    %25 = vector.load %arg5[%c0_5, %c0_6] : memref<16x128xi32, #tpu.memory_space<vmem>>, vector<16x128xi32>
    %26 = arith.extui %24 : vector<16x128xi1> to vector<16x128xi32>
    %27 = arith.addi %25, %26 : vector<16x128xi32>
    %c0_7 = arith.constant 0 : index
    %c0_8 = arith.constant 0 : index
    %28 = vector.load %arg5[%c0_7, %c0_8] : memref<16x128xi32, #tpu.memory_space<vmem>>, vector<16x128xi32>
    tpu.vector_store %arg5[%c0_7, %c0_8], %27 {strides = array<i32>} : memref<16x128xi32, #tpu.memory_space<vmem>>, vector<16x128xi32>,
    %c0_i32_9 = arith.constant 0 : i32
    %29 = arith.cmpi eq, %arg1, %c0_i32_9 : i32
    %30 = arith.extui %29 : i1 to i32
    %c0_i32_10 = arith.constant 0 : i32
    %31 = arith.cmpi ne, %30, %c0_i32_10 : i32
    scf.if %31 {
      %c0_11 = arith.constant 0 : index
      %c0_12 = arith.constant 0 : index
      %32 = vector.load %arg5[%c0_11, %c0_12] : memref<16x128xi32, #tpu.memory_space<vmem>>, vector<16x128xi32>
      %cst_13 = arith.constant dense<0> : vector<128xi32>
      %33 = vector.multi_reduction <add>, %32, %cst_13 [0] : vector<16x128xi32> to vector<128xi32>
      %34 = vector.shape_cast %33 : vector<128xi32> to vector<1x128xi32>
      %c0_14 = arith.constant 0 : index
      %c0_15 = arith.constant 0 : index
      %35 = vector.load %arg4[%c0_14, %c0_15] : memref<1x128xi32, #tpu.memory_space<vmem>>, vector<1x128xi32>
      tpu.vector_store %arg4[%c0_14, %c0_15], %34 {strides = array<i32>} : memref<1x128xi32, #tpu.memory_space<vmem>>, vector<1x128xi32>,
    } else {
    }
    return
  }
  func.func @transform_0(%arg0: i32, %arg1: i32) -> (i32, i32) {
    %c1_i32 = arith.constant 1 : i32
    %0 = arith.muli %arg0, %c1_i32 : i32
    %1 = arith.addi %0, %arg1 : i32
    %c0_i32 = arith.constant 0 : i32
    %2 = arith.minsi %1, %c0_i32 : i32
    %c0_i32_0 = arith.constant 0 : i32
    %c0_i32_1 = arith.constant 0 : i32
    return %2, %c0_i32_0 : i32, i32
  }
  func.func @transform_1(%arg0: i32, %arg1: i32) -> (i32, i32) {
    %c1_i32 = arith.constant 1 : i32
    %0 = arith.muli %arg0, %c1_i32 : i32
    %1 = arith.addi %0, %arg1 : i32
    %c0_i32 = arith.constant 0 : i32
    %2 = arith.minsi %1, %c0_i32 : i32
    %c0_i32_0 = arith.constant 0 : i32
    %c0_i32_1 = arith.constant 0 : i32
    return %2, %c0_i32_0 : i32, i32
  }
  func.func @transform_2(%arg0: i32, %arg1: i32) -> (i32, i32) {
    %c0_i32 = arith.constant 0 : i32
    %c0_i32_0 = arith.constant 0 : i32
    return %c0_i32, %arg0 : i32, i32
  }
}

</mosaic_0001>

<bundles_post_ra>
// kernel: tpu_custom_call.1
= control target key start
LH: loop header
LB: loop body
LE: loop exit
PB: predicated region body
PF: predicated region fallthrough
CT: control target
= control target key end

     0   :  { %7 = vsyncpa [#allocation4], 0  ;;  %s887_s0 = inlined_call_operand.hbm [shape: f32[16,128], index: 0, kind: input, shape index: {}]   ;;  %s888_s1 = inlined_call_operand.hbm [shape: f32[16,128], index: 1, kind: input, shape index: {}]   ;;  %s889_s2 = inlined_call_operand.hbm [shape: s32[1,256], index: 2, kind: output, shape index: {}]  }
   0x1   :  { %9 = vsyncpa [#allocation4 + $0x1], 0 }
   0x2   :  { %10 = vsyncpa [#allocation7], 0 }
   0x3   :  { %12 = vsyncpa [#allocation7 + $0x1], 0 }
   0x4   :  { %13 = vsyncpa [#allocation5], 0 }
   0x5   :  { %15 = vsyncpa [#allocation5 + $0x1], 0  ;;  %s705_s9 = smov 0   ;;  %s707_s10 = smov 0  }
   0x6   :  { %s709_s11 = smov 0   ;;  %s711_s12 = smov 0  }
   0x7   :  { %s713_s13 = smov 0   ;;  %s715_s14 = smov 0  }
   0x8   :  { %s717_s15 = smov 0   ;;  %s719_s16 = smov 0  }
   0x9 LB: > { %s408_s17 = sadd.s32 4294967295, %s682_s16   ;;  %s409_s18 = sadd.s32 4294967294, %s682_s16   ;;  %s682_s16 = sphi %s719_s16, %s21_s16   ;;  %s678_s15 = sphi %s717_s15, %s908_s15   ;;  %s674_s14 = sphi %s715_s14, %s907_s14   ;;  %s670_s13 = sphi %s713_s13, %s877_s13   ;;  %s666_s12 = sphi %s711_s12, %s906_s12   ;;  %s662_s11 = sphi %s709_s11, %s905_s11   ;;  %s658_s10 = sphi %s707_s10, %s904_s10   ;;  %s654_s9 = sphi %s705_s9, %s903_s9  }
   0xa   : > { %s33_s19 = sadd.s32 1, %s678_s15  ;;  %p651_p1 = scmp.ne.s32.totalorder %s670_s13, 0 }
   0xb   : > { %p35_p0 = scmp.ge.s32.totalorder %s33_s19, 2  ;;  %p54_p2 = scmp.eq.s32.totalorder %s682_s16, 0 }
   0xc   : > { %p59_p3 = scmp.ne.s32.totalorder %s670_s13, %s666_s12  ;;  %p60_p5 = scmp.eq.s32.totalorder %s408_s17, 0 }
   0xd   : > { %s910_s19 = smov (%p35_p0, %s33_s19), 0  ;;  %p751_p4 = por %p651_p1, %p54_p2 }
   0xe   : > { %p755_p6 = por %p60_p5, %p59_p3  ;;  %s101_s22 = ssub.s32 %s678_s15, %s910_s19 }
   0xf   : > { %p102_p7 = scmp.eq.s32.totalorder %s101_s22, 0  ;;  %s104_s23 = sadd.s32 1, %s662_s11 }
  0x10   : > { %s893_s21 = scalar_select %p755_p6, 1, 0 }
  0x11   : > { %s763_s24 = scalar_select %p102_p7, %s662_s11, %s104_s23  }
  0x12   : > { %p114_p8 = scmp.ne.s32.totalorder %s662_s11, %s658_s10  ;;  %p115_p9 = scmp.eq.s32.totalorder %s408_s17, 1 }
  0x13   : > { %p120_p10 = scmp.ne.s32.totalorder %s658_s10, %s654_s9  ;;  %p121_p11 = scmp.eq.s32.totalorder %s409_s18, 1 }
  0x14   : > { %p769_p12 = por %p115_p9, %p114_p8  ;;  %p444_p1 = scmp.lt.s32.totalorder %s682_s16, 2 }
  0x15   : > { %p774_p0 = por %p121_p11, %p120_p10  ;;  %s684_s27 = smov [#allocation3]  }
  0x16   : > { %s894_s25 = scalar_select %p769_p12, 1, 0 }
  0x17   : > { %s895_s26 = scalar_select %p774_p0, 1, 0 }
  0x18   : > { %s155_s28 = sshll.u32 %s684_s27, 4  ;;  %p781_p2 = pnand %p444_p1, %p751_p4  ;;  %s156_s28 = int_to_ptr.vmem [resolvable:$true] %s155_s28 }
  0x19   : > { %s521_s4 = scalar_lea.hbm %s887_s0, 256 }
  0x1a   : > { %p522_p3 = scmp.ne.s32.totalorder %s887_s0, %s521_s4  ;;  %p523_p5 = pneg %p781_p2 }
  0x1b   : > { %p528_p8 = scmp.lt.s32.totalorder %s521_s4, %s521_s4 }
  0x1c   : > { %p524_p7 = pnand %p523_p5, %p522_p3 }
  0x1e   : > { %p525_p4 = pneg %p524_p7 }
  0x20   : > { %p530_p9 = pnand %p528_p8, %p525_p4 }
  0x22   : > { %533 = shalt.err (!%p530_p9)
}
  0x23   : > { %s534_s7 = scalar_lea.vmem %s156_s28, 256  ;;  %s541_s8 = scalar_lea.vmem %s156_s28, 512 }
  0x24   : > { %p535_p10 = scmp.ne.s32.totalorder %s156_s28, %s534_s7  ;;  %p542_p13 = scmp.lt.s32.totalorder %s156_s28, %s156_s28 }
  0x25   : > { %p543_p0 = scmp.lt.s32.totalorder %s541_s8, %s534_s7 }
  0x26   : > { %p537_p11 = pnand %p535_p10, %p523_p5 }
  0x27   : > { %p544_p12 = por %p543_p0, %p542_p13 }
  0x28   : > { %p538_p1 = pneg %p537_p11 }
  0x2a   : > { %p545_p6 = pnand %p544_p12, %p538_p1 }
  0x2c   : > { %548 = shalt.err (!%p545_p6)
}
  0x2d   : > { %s685_s12 = smov 128   ;;  %s686_s17 = smov 8  }
  0x2e   : > { %436 = dma.hbm_to_vmem [thread:$0]  (!%p781_p2), %s887_s0, 256, %s156_s28, [#allocation4], %s685_s12, %s685_s12, %s686_s17  }
  0x2f   : > { %p418_p3 = scmp.ge.s32.totalorder %s682_s16, 1  ;;  %p187_p7 = scmp.lt.s32.totalorder %s682_s16, 3 }
  0x30   : > { %s687_s23 = smov [#allocation6]   ;;  %s549_s4 = scalar_lea.hbm %s888_s1, 256 }
  0x31   : > { %p806_p4 = pnand %p418_p3, %p187_p7  ;;  %s179_s27 = sshll.u32 %s687_s23, 4  ;;  %s180_s27 = int_to_ptr.vmem [resolvable:$true] %s179_s27 }
  0x32   : > { %p550_p6 = scmp.ne.s32.totalorder %s888_s1, %s549_s4  ;;  %p556_p0 = scmp.lt.s32.totalorder %s549_s4, %s549_s4 }
  0x33   : > { %s897_s22 = scalar_select %p806_p4, 1, 0 }
  0x34   : > { %p552_p12 = pnand %p550_p6, %p523_p5 }
  0x36   : > { %p553_p13 = pneg %p552_p12 }
  0x38   : > { %p558_p8 = pnand %p556_p0, %p553_p13 }
  0x3a   : > { %561 = shalt.err (!%p558_p8)
}
  0x3b   : > { %s562_s28 = scalar_lea.vmem %s180_s27, 256  ;;  %s569_s7 = scalar_lea.vmem %s180_s27, 512 }
  0x3c   : > { %p563_p9 = scmp.ne.s32.totalorder %s180_s27, %s562_s28  ;;  %p570_p1 = scmp.lt.s32.totalorder %s180_s27, %s180_s27 }
  0x3d   : > { %p571_p3 = scmp.lt.s32.totalorder %s569_s7, %s562_s28 }
  0x3e   : > { %p565_p10 = pnand %p563_p9, %p523_p5 }
  0x3f   : > { %p572_p7 = por %p571_p3, %p570_p1 }
  0x40   : > { %p566_p11 = pneg %p565_p10 }
  0x42   : > { %p573_p4 = pnand %p572_p7, %p566_p11 }
  0x44   : > { %576 = shalt.err (!%p573_p4)
}
  0x45   : > { %439 = dma.hbm_to_vmem [thread:$0]  (!%p781_p2), %s888_s1, 256, %s180_s27, [#allocation7], %s685_s12, %s685_s12, %s686_s17  }
  0x46   : > { %p898_p6 = scmp.ne.s32.totalorder %s897_s22, 0 }
  0x47   : > { %s193_s20 = sand.u32 (!%p898_p6), 1, %s670_s13   ;;  %p899_p5 = scmp.ne.s32.totalorder (!%p898_p6), %s893_s21, 0 }
  0x48   : > { %191 = sbr.rel (%p898_p6) target bundleno = 122 (0x7a), region = 28  ;;  %s419_s23 = sshll.u32 (!%p898_p6), %s193_s20, 4 }
  0x49   : > { %s194_s30 = scalar_lea.sflag (!%p898_p6), [#allocation4], %s193_s20  ;;  %s197_s3 = scalar_lea.vmem (!%p898_p6), [#allocation3], %s419_s23 }
  0x4d   : > { %640 = dma.done.wait (%p899_p5), %s194_s30, 256  }
  0x4e   : > { %642 = vsyncadd (%p899_p5), %s194_s30, 4294967040  ;;  %s203_s29 = scalar_lea.sflag [#allocation7], %s193_s20  ;;  %s206_s4 = scalar_lea.vmem [#allocation6], %s419_s23 }
  0x4f   : > { %644 = dma.done.wait (%p899_p5), %s203_s29, 256  }
  0x50   : > { %646 = vsyncadd (%p899_p5), %s203_s29, 4294967040  ;;  %v250_v0 = vlaneseq  ;;  %s421_s12 = sshll.u32 %s674_s14, 4  ;;  %v245_v8 = vld [vmem:[%s197_s3] sm:$0xff]  ;;  %v246_v9 = vld [vmem:[%s197_s3 + $0x8] sm:$0xff]  ;;  %v688_v19 = vmov 0   ;;  %s229_s21 = sand.u32 1, %s658_s10  }
  0x51   : > { %v256_v1 = vstv %s421_s12  ;;  %v247_v10 = vld [vmem:[%s206_s4] sm:$0xff]  ;;  %v248_v11 = vld [vmem:[%s206_s4 + $0x8] sm:$0xff]  ;;  %v269_v15 = vmul.f32 1.25, %v245_v8  ;;  %v270_v17 = vmul.f32 1.25, %v246_v9  ;;  %s230_s17 = scalar_lea.vmem [#allocation8], %s229_s21  ;;  %s309_s6 = scalar_lea.hbm %s889_s2, %s421_s12 }
  0x52   : > { %v251_v2 = vshrl.u32 %v250_v0, 7  ;;  %v254_v4 = vand.u32 127, %v250_v0  ;;  %v265_v14 = vmul.f32 1.25, %v247_v10  ;;  %v266_v16 = vmul.f32 1.25, %v248_v11  ;;  %s311_s22 = sshll.u32 %s230_s17, 4  ;;  %s299_s28 = scalar_lea.sflag [#allocation5], %s229_s21  ;;  %s312_s22 = int_to_ptr.vmem [resolvable:$true] %s311_s22 }
  0x53   : > { %vm271_vm2 = vcmp.lt.f32.partialorder %v247_v10, %v269_v15  ;;  %vm272_vm4 = vcmp.lt.f32.partialorder %v248_v11, %v270_v17  ;;  %s577_s7 = scalar_lea.vmem %s312_s22, 16  ;;  %p900_p4 = scmp.ne.s32.totalorder %s894_s25, 0 }
  0x54   : > { %v252_v3 = vadd.s32 8, %v251_v2  ;;  %v257_v5 = vadd.s32 %v256_v1, %v251_v2  ;;  %vm267_vm1 = vcmp.lt.f32.partialorder %v245_v8, %v265_v14  ;;  %vm268_vm3 = vcmp.lt.f32.partialorder %v246_v9, %v266_v16  ;;  %p578_p2 = scmp.ne.s32.totalorder %s312_s22, %s577_s7  ;;  %s689_s8 = smov [#allocation8]  }
  0x55   : > { %vm273_vm5 = vmand %vm267_vm1, %vm271_vm2  ;;  %s581_s18 = sshll.u32 %s689_s8, 4  ;;  %s582_s18 = int_to_ptr.vmem [resolvable:$false] %s581_s18 }
  0x56   : > { %v258_v6 = vadd.s32 %v256_v1, %v252_v3  ;;  %v259_v7 = vmul.u32 128, %v257_v5  ;;  %vm274_vm7 = vmand %vm268_vm3, %vm272_vm4  ;;  %p579_p12 = pnand %p578_p2, %p900_p4  ;;  %s583_s20 = scalar_lea.vmem %s582_s18, 32 }
  0x57   : > { %p584_p0 = scmp.lt.s32.totalorder %s312_s22, %s582_s18  ;;  %p585_p8 = scmp.lt.s32.totalorder %s583_s20, %s577_s7 }
  0x58   : > { %v260_v12 = vmul.u32 128, %v258_v6  ;;  %v261_v13 = vadd.s32 %v259_v7, %v254_v4  ;;  %p580_p13 = pneg %p579_p12 }
  0x59   : > { %p586_p9 = por %p585_p8, %p584_p0 }
  0x5a   : > { %v262_v18 = vadd.s32 %v260_v12, %v254_v4  ;;  %vm263_vm0 = vcmp.lt.s32.totalorder %v261_v13, 2048 }
  0x5b   : > { %vm275_vm8 = vmand %vm273_vm5, %vm263_vm0  ;;  %p587_p10 = pnand %p586_p9, %p580_p13 }
  0x5c   : > { %vm264_vm6 = vcmp.lt.s32.totalorder %v262_v18, 2048  ;;  %v279_v20 = vsel %vm275_vm8, 1, %v688_v19 }
  0x5d   : > { %vm276_vm9 = vmand %vm274_vm7, %vm264_vm6 }
  0x5e   : > { %v280_v21 = vsel %vm276_vm9, 1, %v688_v19 }
  0x5f   : > { %v290_v22 = vadd.s32 %v280_v21, %v279_v20 }
  0x61   : > { %v291_v23 = vrot.slane %v290_v22, 4 }
  0x63   : > { %v292_v24 = vadd.s32 %v291_v23, %v290_v22 }
  0x65   : > { %v293_v25 = vrot.slane %v292_v24, 2 }
  0x67   : > { %v294_v26 = vadd.s32 %v293_v25, %v292_v24 }
  0x69   : > { %v295_v27 = vrot.slane %v294_v26, 1 }
  0x6b   : > { %v296_v28 = vadd.s32 %v295_v27, %v294_v26 }
  0x6d   : > { %297 = vst [vmem:[%s230_s17] sm:$0x1] %v296_v28 }
  0x6e   : > { %590 = shalt.err (!%p587_p10)
}
  0x6f   : > { %s591_s14 = scalar_lea.hbm %s309_s6, 16  ;;  %s595_s3 = scalar_lea.hbm %s889_s2, 32 }
  0x70   : > { %p592_p11 = scmp.ne.s32.totalorder %s309_s6, %s591_s14  ;;  %p596_p7 = scmp.lt.s32.totalorder %s309_s6, %s889_s2 }
  0x71   : > { %p597_p6 = scmp.lt.s32.totalorder %s595_s3, %s591_s14 }
  0x72   : > { %p593_p1 = pnand %p592_p11, %p900_p4 }
  0x73   : > { %p598_p5 = por %p597_p6, %p596_p7 }
  0x74   : > { %p594_p3 = pneg %p593_p1 }
  0x76   : > { %p599_p2 = pnand %p598_p5, %p594_p3 }
  0x78   : > { %602 = shalt.err (!%p599_p2)
}
  0x79   : > { %431 = dma.vmem_to_hbm [thread:$0]  (%p900_p4), %s312_s22, 16, %s309_s6, %s299_s28  }
  0x7a PF: > { %s323_s12 = sand.u32 1, %s654_s9   ;;  %p901_p12 = scmp.ne.s32.totalorder %s895_s26, 0 }
  0x7b   : > { %p902_p13 = scmp.ge.s32.totalorder %s682_s16, 2  ;;  %s324_s21 = scalar_lea.sflag [#allocation5], %s323_s12 }
  0x7d   : > { %p441_p0 = pnand %p902_p13, %p901_p12 }
  0x7f   : > { %p442_p8 = pneg %p441_p0 }
  0x81   : > { %648 = dma.done.wait (%p442_p8), %s324_s21, 16  }
  0x82   : > { %650 = vsyncadd (%p442_p8), %s324_s21, 4294967280  ;;  %s21_s16 = sadd.s32 1, %s682_s16   ;;  %s903_s9 = smov %s658_s10 }
  0x83   : > { %p18_p9 = scmp.ge.s32.totalorder %s21_s16, 4   ;;  %s904_s10 = smov %s662_s11 }
  0x84   : > { %s905_s11 = smov %s763_s24  ;;  %s906_s12 = smov %s670_s13 }
  0x85   : > { %s877_s13 = smov 0   ;;  %s907_s14 = smov %s678_s15 }
  0x86   : > { %s908_s15 = smov %s910_s19  ;;  %20 = sbr.rel (!%p18_p9) target bundleno = 9 (0x9), region = 94 }
  0x8b   :  { %328 = vsyncpa [#allocation4], 1 }
  0x8c   :  { %330 = vsyncpa [#allocation4 + $0x1], 1 }
  0x8d   :  { %331 = vsyncpa [#allocation7], 1 }
  0x8e   :  { %333 = vsyncpa [#allocation7 + $0x1], 1 }
  0x8f   :  { %334 = vsyncpa [#allocation5], 1 }
  0x90   :  { %336 = vsyncpa [#allocation5 + $0x1], 1 }

</bundles_post_ra>
